<compile_context>
chip_gen: v5e
topology: v5e:2x2
jax: 0.10.0
libtpu: 0.0.40
codegen_flags: <defaults>
</compile_context>

<pallas_src>
import functools

import jax
import jax.numpy as jnp
from jax.experimental import pallas as pl
from jax.experimental.pallas import tpu as pltpu


def _round_up(x: int, m: int) -> int:
    return ((x + m - 1) // m) * m


def decoder_kernel(x_ref, w1_ref, b1_ref, w2_ref, b2_ref, o_ref, *, compute_dtype):
    # x_ref : (TB, F) native dtype     w1_ref: (F, Hp)  b1_ref: (1, Hp) [f32]
    # w2_ref: (Hp, F)                  b2_ref: (1, F)   [f32]
    # o_ref : (TB, F) out dtype
    x = x_ref[...].astype(compute_dtype)            # cast in-kernel (no HBM temp)
    h = jnp.dot(x, w1_ref[...], preferred_element_type=jnp.float32) + b1_ref[...]
    h = jnp.maximum(h, 0.0)                         # f32 epilogue (v5e-safe)
    y = jnp.dot(h.astype(compute_dtype), w2_ref[...],
                preferred_element_type=jnp.float32) + b2_ref[...]
    o_ref[...] = jnp.maximum(y, 0.0).astype(o_ref.dtype)


def sample_decoder(x, w1, b1, w2, b2, *, tile_b=None,
                   compute_dtype=jnp.bfloat16, out_dtype=None):
    """Fused forward: relu(relu(x @ w1 + b1) @ w2 + b2).

    x : [..., F] (leading dims flattened into one batch)
    w1: [F, H]  b1: [H]  w2: [H, F]  b2: [F]

    Note: the default bf16-operand path accumulates in f32 but is not
    bit-comparable with an f32 reference; pass compute_dtype=jnp.float32 for
    exact-precision results.
    """
    out_dtype = x.dtype if out_dtype is None else out_dtype
    orig_shape = x.shape
    F = orig_shape[-1]
    H = w1.shape[1]
    assert w1.shape == (F, H) and w2.shape == (H, F)
    assert b1.shape == (H,) and b2.shape == (F,)

    x2d = x.reshape(-1, F)
    B = x2d.shape[0]

    # Hidden dim padded to a 128 multiple (weights are small & amortizable;
    # keeps the intermediate lane-dense).  Padded hidden units get bias 0 ->
    # relu -> 0 and hit zero rows of W2, contributing exactly nothing.
    # TODO(synk): at production widths, round 129-255 up to 256 on v6e/v7x
    # (256-wide MXU); keep 128 multiples on v5e.
    H_pad = max(128, _round_up(H, 128))

    x_itm = jnp.dtype(x2d.dtype).itemsize
    out_itm = jnp.dtype(out_dtype).itemsize
    c_itm = jnp.dtype(compute_dtype).itemsize

    # Sublane-row alignment: 8 rows for f32, 16 for bf16, 32 for 1-byte dtypes.
    min_itm = min(x_itm, out_itm, c_itm)
    row_align = 8 * (4 // min_itm)

    # --- VMEM accounting (per batch row + resident weights) ----------------
    per_row = (2 * F * x_itm          # double-buffered x tiles
               + 2 * F * out_itm      # double-buffered out tiles
               + F * c_itm            # x cast to compute dtype
               + H_pad * 4            # h in f32
               + H_pad * c_itm        # h cast for second matmul
               + F * 4)               # y in f32
    weight_bytes = 2 * (2 * F * H_pad * c_itm) + 2 * (H_pad + F) * 4  # worst case: double-buffered

    try:
        vmem_cap = int(pltpu.get_tpu_info().vmem_capacity_bytes)
    except Exception:
        vmem_cap = 64 * 2**20                      # v7x floor; conservative on v5e/v6e

    tile_budget = max(8 * 2**20, int(0.6 * vmem_cap) - weight_bytes)
    tile_cap = max(128, min(4096, (tile_budget // per_row) // 128 * 128))

    # --- batch tiling -------------------------------------------------------
    if tile_b is not None:
        assert tile_b % row_align == 0, (
            f"tile_b must be a multiple of {row_align} for these dtypes")
        num_blocks = pl.cdiv(B, tile_b)
    elif B <= tile_cap:
        # Small/medium batch: a single, minimally padded block (no forced
        # 128-row / 2-block duplication of work).
        tile_b = _round_up(max(B, row_align), row_align)
        num_blocks = 1
    else:
        # Large batch: split; keep the block count even so the "parallel" axis
        # shards evenly across v7x's two TensorCores.
        num_blocks = pl.cdiv(B, tile_cap)
        if num_blocks % 2 == 1:
            num_blocks += 1
        tile_b = _round_up(pl.cdiv(B, num_blocks), 128)
    B_pad = num_blocks * tile_b

    # Pad only the batch dim of x (kept at native dtype; cast happens in-kernel).
    x_p = x2d if B_pad == B else jnp.pad(x2d, ((0, B_pad - B), (0, 0)))

    # Padded weights/biases (small, amortizable). Biases stay f32 for the
    # f32 epilogue; operands in compute_dtype.
    w1_p = jnp.pad(w1, ((0, 0), (0, H_pad - H))).astype(compute_dtype)
    b1_p = jnp.pad(b1, (0, H_pad - H)).reshape(1, H_pad).astype(jnp.float32)
    w2_p = jnp.pad(w2, ((0, H_pad - H), (0, 0))).astype(compute_dtype)
    b2_p = b2.reshape(1, F).astype(jnp.float32)

    # --- cost estimate & VMEM limit ----------------------------------------
    flops = 4 * B_pad * F * H_pad      # two matmuls, 2*M*N*K each
    bytes_accessed = (B_pad * F * x_itm
                      + 2 * F * H_pad * c_itm
                      + (H_pad + F) * 4
                      + B_pad * F * out_itm)
    cost = pl.CostEstimate(flops=flops, transcendentals=0,
                           bytes_accessed=bytes_accessed)

    vmem_need = tile_b * per_row + weight_bytes
    vmem_limit = int(min(max(16 * 2**20, 1.25 * vmem_need + (2 << 20)),
                         int(0.9 * vmem_cap)))

    # TODO(synk): if F/H grow to production widths, add a hidden-dim grid axis
    # ("arbitrary") with an f32 accumulator scratch once the resident weights
    # approach ~48 MiB on v7x (~100 MiB on v5e/v6e) instead of keeping both
    # full weight matrices in VMEM.

    kernel = functools.partial(decoder_kernel, compute_dtype=compute_dtype)

    def build(weight_pipeline_mode):
        def wspec(shape):
            if weight_pipeline_mode is None:
                return pl.BlockSpec(shape, lambda i: (0, 0))
            return pl.BlockSpec(shape, lambda i: (0, 0),
                                pipeline_mode=weight_pipeline_mode)

        grid_spec = pl.GridSpec(
            grid=(num_blocks,),
            in_specs=[
                pl.BlockSpec((tile_b, F), lambda i: (i, 0)),   # x tile (native dtype)
                wspec((F, H_pad)),                             # W1 (grid-invariant)
                wspec((1, H_pad)),                             # b1
                wspec((H_pad, F)),                             # W2
                wspec((1, F)),                                 # b2
            ],
            out_specs=pl.BlockSpec((tile_b, F), lambda i: (i, 0)),
        )
        return pl.pallas_call(
            kernel,
            out_shape=jax.ShapeDtypeStruct((B_pad, F), out_dtype),
            grid_spec=grid_spec,
            compiler_params=pltpu.CompilerParams(
                dimension_semantics=("parallel",),
                vmem_limit_bytes=vmem_limit),
            cost_estimate=cost,
        )

    try:
        # Grid-invariant weight/bias blocks: request a single buffer (halves
        # their VMEM footprint; matters on v7x's 64 MiB VMEM at prod widths).
        out_p = build(pl.Buffered(buffer_count=1))(x_p, w1_p, b1_p, w2_p, b2_p)
    except Exception:
        # Fallback if this Pallas/Mosaic version rejects single-buffered blocks.
        out_p = build(None)(x_p, w1_p, b1_p, w2_p, b2_p)

    out = out_p if B_pad == B else out_p[:B]
    return out.reshape(orig_shape[:-1] + (F,))


def reference(x, w1, b1, w2, b2):
    x2d = x.reshape(-1, x.shape[-1])
    h = jnp.maximum(x2d @ w1 + b1, 0.0)
    y = jnp.maximum(h @ w2 + b2, 0.0)
    return y.reshape(x.shape)


if __name__ == "__main__":
    feature_size = 32
    hidden_size = 64
    batch = 8

    key = jax.random.PRNGKey(0)
    kx, kw1, kb1, kw2, kb2, kx3, kxb = jax.random.split(key, 7)

    x = jax.random.normal(kx, (batch, feature_size), dtype=jnp.float32)
    w1 = jax.random.normal(kw1, (feature_size, hidden_size), dtype=jnp.float32) * 0.1
    b1 = jax.random.normal(kb1, (hidden_size,), dtype=jnp.float32) * 0.1
    w2 = jax.random.normal(kw2, (hidden_size, feature_size), dtype=jnp.float32) * 0.1
    b2 = jax.random.normal(kb2, (feature_size,), dtype=jnp.float32) * 0.1

    ref = reference(x, w1, b1, w2, b2)

    # f32 path: exact-precision check against the reference.
    out_f32 = jax.block_until_ready(
        sample_decoder(x, w1, b1, w2, b2, compute_dtype=jnp.float32))
    assert out_f32.shape == (batch, feature_size)
    assert jnp.allclose(out_f32, ref, atol=1e-5, rtol=1e-5)

    # bf16 operands / f32 accumulation (default fast path): looser tolerance.
    out_bf16 = jax.block_until_ready(sample_decoder(x, w1, b1, w2, b2))
    assert out_bf16.shape == (batch, feature_size)
    assert jnp.allclose(out_bf16, ref, atol=5e-2, rtol=5e-2)

    # bf16 output option (smaller output HBM stream).
    out_bf16_store = jax.block_until_ready(
        sample_decoder(x, w1, b1, w2, b2, out_dtype=jnp.bfloat16))
    assert out_bf16_store.dtype == jnp.bfloat16
    assert jnp.allclose(out_bf16_store.astype(jnp.float32), ref, atol=5e-2, rtol=5e-2)

    # 3-D input (leading dims flattened into the batch).
    x3 = jax.random.normal(kx3, (2, 4, feature_size), dtype=jnp.float32)
    out3 = jax.block_until_ready(
        sample_decoder(x3, w1, b1, w2, b2, compute_dtype=jnp.float32))
    assert out3.shape == (2, 4, feature_size)
    assert jnp.allclose(out3, reference(x3, w1, b1, w2, b2), atol=1e-5, rtol=1e-5)

    # Multi-block path: user tile_b, uneven batch -> batch padding + slicing.
    xb = jax.random.normal(kxb, (300, feature_size), dtype=jnp.float32)
    outb = jax.block_until_ready(
        sample_decoder(xb, w1, b1, w2, b2, tile_b=128, compute_dtype=jnp.float32))
    assert outb.shape == (300, feature_size)
    assert jnp.allclose(outb, reference(xb, w1, b1, w2, b2), atol=1e-5, rtol=1e-5)

    print("KERNEL_OK")
</pallas_src>

<mosaic_0001>
module attributes {stable_mosaic.version = 11 : i64} {
  func.func @decoder_kernel(%arg0: i32, %arg1: memref<8x32xf32, #tpu.memory_space<vmem>>, %arg2: memref<32x128xf32, #tpu.memory_space<vmem>>, %arg3: memref<1x128xf32, #tpu.memory_space<vmem>>, %arg4: memref<128x32xf32, #tpu.memory_space<vmem>>, %arg5: memref<1x32xf32, #tpu.memory_space<vmem>>, %arg6: memref<8x32xf32, #tpu.memory_space<vmem>>) attributes {dimension_semantics = [#tpu.dimension_semantics<parallel>], iteration_bounds = array<i64: 1>, scalar_prefetch = 0 : i64, scratch_operands = 0 : i64, tpu.core_type = #tpu.core_type<tc>, window_params = [{transform_indices = @transform_0, window_bounds = array<i64: 8, 32>}, {pipeline_mode = #tpu.pipeline_mode<synchronous>, transform_indices = @transform_1, window_bounds = array<i64: 32, 128>}, {pipeline_mode = #tpu.pipeline_mode<synchronous>, transform_indices = @transform_2, window_bounds = array<i64: 1, 128>}, {pipeline_mode = #tpu.pipeline_mode<synchronous>, transform_indices = @transform_3, window_bounds = array<i64: 128, 32>}, {pipeline_mode = #tpu.pipeline_mode<synchronous>, transform_indices = @transform_4, window_bounds = array<i64: 1, 32>}, {transform_indices = @transform_5, window_bounds = array<i64: 8, 32>}]} {
    %c0 = arith.constant 0 : index
    %c0_0 = arith.constant 0 : index
    %0 = vector.load %arg1[%c0, %c0_0] : memref<8x32xf32, #tpu.memory_space<vmem>>, vector<8x32xf32>
    %c0_1 = arith.constant 0 : index
    %c0_2 = arith.constant 0 : index
    %1 = vector.load %arg2[%c0_1, %c0_2] : memref<32x128xf32, #tpu.memory_space<vmem>>, vector<32x128xf32>
    %cst = arith.constant dense<0.000000e+00> : vector<8x128xf32>
    %2 = tpu.matmul %0, %1, %cst {dimension_numbers = #tpu.dot_dimension_numbers<[1], [0], [0], [1], [0, 0, 1, 1], [], []>} : vector<8x32xf32>, vector<32x128xf32>, vector<8x128xf32> -> vector<8x128xf32>
    %c0_3 = arith.constant 0 : index
    %c0_4 = arith.constant 0 : index
    %3 = vector.load %arg3[%c0_3, %c0_4] : memref<1x128xf32, #tpu.memory_space<vmem>>, vector<1x128xf32>
    %4 = vector.broadcast %3 : vector<1x128xf32> to vector<8x128xf32>
    %5 = arith.addf %2, %4 : vector<8x128xf32>
    %cst_5 = arith.constant 0.000000e+00 : f32
    %6 = vector.broadcast %cst_5 : f32 to vector<8x128xf32>
    %7 = arith.maximumf %5, %6 : vector<8x128xf32>
    %c0_6 = arith.constant 0 : index
    %c0_7 = arith.constant 0 : index
    %8 = vector.load %arg4[%c0_6, %c0_7] : memref<128x32xf32, #tpu.memory_space<vmem>>, vector<128x32xf32>
    %cst_8 = arith.constant dense<0.000000e+00> : vector<8x32xf32>
    %9 = tpu.matmul %7, %8, %cst_8 {dimension_numbers = #tpu.dot_dimension_numbers<[1], [0], [0], [1], [0, 0, 1, 1], [], []>} : vector<8x128xf32>, vector<128x32xf32>, vector<8x32xf32> -> vector<8x32xf32>
    %c0_9 = arith.constant 0 : index
    %c0_10 = arith.constant 0 : index
    %10 = vector.load %arg5[%c0_9, %c0_10] : memref<1x32xf32, #tpu.memory_space<vmem>>, vector<1x32xf32>
    %11 = vector.broadcast %10 : vector<1x32xf32> to vector<8x32xf32>
    %12 = arith.addf %9, %11 : vector<8x32xf32>
    %cst_11 = arith.constant 0.000000e+00 : f32
    %13 = vector.broadcast %cst_11 : f32 to vector<8x32xf32>
    %14 = arith.maximumf %12, %13 : vector<8x32xf32>
    %c0_12 = arith.constant 0 : index
    %c0_13 = arith.constant 0 : index
    %15 = vector.load %arg6[%c0_12, %c0_13] : memref<8x32xf32, #tpu.memory_space<vmem>>, vector<8x32xf32>
    tpu.vector_store %arg6[%c0_12, %c0_13], %14 {strides = array<i32>} : memref<8x32xf32, #tpu.memory_space<vmem>>, vector<8x32xf32>,
    return
  }
  func.func @transform_0(%arg0: i32) -> (i32, i32) {
    %c0_i32 = arith.constant 0 : i32
    %c0_i32_0 = arith.constant 0 : i32
    return %arg0, %c0_i32 : i32, i32
  }
  func.func @transform_1(%arg0: i32) -> (i32, i32) {
    %c0_i32 = arith.constant 0 : i32
    %c0_i32_0 = arith.constant 0 : i32
    %c0_i32_1 = arith.constant 0 : i32
    return %c0_i32, %c0_i32_0 : i32, i32
  }
  func.func @transform_2(%arg0: i32) -> (i32, i32) {
    %c0_i32 = arith.constant 0 : i32
    %c0_i32_0 = arith.constant 0 : i32
    %c0_i32_1 = arith.constant 0 : i32
    return %c0_i32, %c0_i32_0 : i32, i32
  }
  func.func @transform_3(%arg0: i32) -> (i32, i32) {
    %c0_i32 = arith.constant 0 : i32
    %c0_i32_0 = arith.constant 0 : i32
    %c0_i32_1 = arith.constant 0 : i32
    return %c0_i32, %c0_i32_0 : i32, i32
  }
  func.func @transform_4(%arg0: i32) -> (i32, i32) {
    %c0_i32 = arith.constant 0 : i32
    %c0_i32_0 = arith.constant 0 : i32
    %c0_i32_1 = arith.constant 0 : i32
    return %c0_i32, %c0_i32_0 : i32, i32
  }
  func.func @transform_5(%arg0: i32) -> (i32, i32) {
    %c0_i32 = arith.constant 0 : i32
    %c0_i32_0 = arith.constant 0 : i32
    return %arg0, %c0_i32 : i32, i32
  }
}

module attributes {stable_mosaic.version = 11 : i64} {
  func.func @decoder_kernel(%arg0: i32, %arg1: memref<8x32xf32, #tpu.memory_space<vmem>>, %arg2: memref<32x128xf32, #tpu.memory_space<vmem>>, %arg3: memref<1x128xf32, #tpu.memory_space<vmem>>, %arg4: memref<128x32xf32, #tpu.memory_space<vmem>>, %arg5: memref<1x32xf32, #tpu.memory_space<vmem>>, %arg6: memref<8x32xf32, #tpu.memory_space<vmem>>) attributes {dimension_semantics = [#tpu.dimension_semantics<parallel>], iteration_bounds = array<i64: 1>, scalar_prefetch = 0 : i64, scratch_operands = 0 : i64, tpu.core_type = #tpu.core_type<tc>, window_params = [{transform_indices = @transform_0, window_bounds = array<i64: 8, 32>}, {pipeline_mode = #tpu.pipeline_mode<synchronous>, transform_indices = @transform_1, window_bounds = array<i64: 32, 128>}, {pipeline_mode = #tpu.pipeline_mode<synchronous>, transform_indices = @transform_2, window_bounds = array<i64: 1, 128>}, {pipeline_mode = #tpu.pipeline_mode<synchronous>, transform_indices = @transform_3, window_bounds = array<i64: 128, 32>}, {pipeline_mode = #tpu.pipeline_mode<synchronous>, transform_indices = @transform_4, window_bounds = array<i64: 1, 32>}, {transform_indices = @transform_5, window_bounds = array<i64: 8, 32>}]} {
    %c0 = arith.constant 0 : index
    %c0_0 = arith.constant 0 : index
    %0 = vector.load %arg1[%c0, %c0_0] : memref<8x32xf32, #tpu.memory_space<vmem>>, vector<8x32xf32>
    %c0_1 = arith.constant 0 : index
    %c0_2 = arith.constant 0 : index
    %1 = vector.load %arg2[%c0_1, %c0_2] : memref<32x128xf32, #tpu.memory_space<vmem>>, vector<32x128xf32>
    %cst = arith.constant dense<0.000000e+00> : vector<8x128xf32>
    %2 = tpu.matmul %0, %1, %cst {dimension_numbers = #tpu.dot_dimension_numbers<[1], [0], [0], [1], [0, 0, 1, 1], [], []>} : vector<8x32xf32>, vector<32x128xf32>, vector<8x128xf32> -> vector<8x128xf32>
    %c0_3 = arith.constant 0 : index
    %c0_4 = arith.constant 0 : index
    %3 = vector.load %arg3[%c0_3, %c0_4] : memref<1x128xf32, #tpu.memory_space<vmem>>, vector<1x128xf32>
    %4 = vector.broadcast %3 : vector<1x128xf32> to vector<8x128xf32>
    %5 = arith.addf %2, %4 : vector<8x128xf32>
    %cst_5 = arith.constant 0.000000e+00 : f32
    %6 = vector.broadcast %cst_5 : f32 to vector<8x128xf32>
    %7 = arith.maximumf %5, %6 : vector<8x128xf32>
    %c0_6 = arith.constant 0 : index
    %c0_7 = arith.constant 0 : index
    %8 = vector.load %arg4[%c0_6, %c0_7] : memref<128x32xf32, #tpu.memory_space<vmem>>, vector<128x32xf32>
    %cst_8 = arith.constant dense<0.000000e+00> : vector<8x32xf32>
    %9 = tpu.matmul %7, %8, %cst_8 {dimension_numbers = #tpu.dot_dimension_numbers<[1], [0], [0], [1], [0, 0, 1, 1], [], []>} : vector<8x128xf32>, vector<128x32xf32>, vector<8x32xf32> -> vector<8x32xf32>
    %c0_9 = arith.constant 0 : index
    %c0_10 = arith.constant 0 : index
    %10 = vector.load %arg5[%c0_9, %c0_10] : memref<1x32xf32, #tpu.memory_space<vmem>>, vector<1x32xf32>
    %11 = vector.broadcast %10 : vector<1x32xf32> to vector<8x32xf32>
    %12 = arith.addf %9, %11 : vector<8x32xf32>
    %cst_11 = arith.constant 0.000000e+00 : f32
    %13 = vector.broadcast %cst_11 : f32 to vector<8x32xf32>
    %14 = arith.maximumf %12, %13 : vector<8x32xf32>
    %c0_12 = arith.constant 0 : index
    %c0_13 = arith.constant 0 : index
    %15 = vector.load %arg6[%c0_12, %c0_13] : memref<8x32xf32, #tpu.memory_space<vmem>>, vector<8x32xf32>
    tpu.vector_store %arg6[%c0_12, %c0_13], %14 {strides = array<i32>} : memref<8x32xf32, #tpu.memory_space<vmem>>, vector<8x32xf32>,
    return
  }
  func.func @transform_0(%arg0: i32) -> (i32, i32) {
    %c0_i32 = arith.constant 0 : i32
    %c0_i32_0 = arith.constant 0 : i32
    return %arg0, %c0_i32 : i32, i32
  }
  func.func @transform_1(%arg0: i32) -> (i32, i32) {
    %c0_i32 = arith.constant 0 : i32
    %c0_i32_0 = arith.constant 0 : i32
    %c0_i32_1 = arith.constant 0 : i32
    return %c0_i32, %c0_i32_0 : i32, i32
  }
  func.func @transform_2(%arg0: i32) -> (i32, i32) {
    %c0_i32 = arith.constant 0 : i32
    %c0_i32_0 = arith.constant 0 : i32
    %c0_i32_1 = arith.constant 0 : i32
    return %c0_i32, %c0_i32_0 : i32, i32
  }
  func.func @transform_3(%arg0: i32) -> (i32, i32) {
    %c0_i32 = arith.constant 0 : i32
    %c0_i32_0 = arith.constant 0 : i32
    %c0_i32_1 = arith.constant 0 : i32
    return %c0_i32, %c0_i32_0 : i32, i32
  }
  func.func @transform_4(%arg0: i32) -> (i32, i32) {
    %c0_i32 = arith.constant 0 : i32
    %c0_i32_0 = arith.constant 0 : i32
    %c0_i32_1 = arith.constant 0 : i32
    return %c0_i32, %c0_i32_0 : i32, i32
  }
  func.func @transform_5(%arg0: i32) -> (i32, i32) {
    %c0_i32 = arith.constant 0 : i32
    %c0_i32_0 = arith.constant 0 : i32
    return %arg0, %c0_i32 : i32, i32
  }
}

</mosaic_0001>

<bundles_post_ra>
// kernel: tpu_custom_call.1
= control target key start
LH: loop header
LB: loop body
LE: loop exit
PB: predicated region body
PF: predicated region fallthrough
CT: control target
= control target key end

     0   :  { %vm30_vm0 = vcmask 261120   ;;  %s248_s0 = inlined_call_operand.vmem [shape: f32[8,32], index: 0, kind: input, shape index: {}]   ;;  %s249_s1 = inlined_call_operand.vmem [shape: f32[32,128], index: 1, kind: input, shape index: {}]   ;;  %s250_s2 = inlined_call_operand.vmem [shape: f32[1,128], index: 2, kind: input, shape index: {}]   ;;  %s251_s3 = inlined_call_operand.vmem [shape: f32[128,32], index: 3, kind: input, shape index: {}]   ;;  %s252_s4 = inlined_call_operand.vmem [shape: f32[1,32], index: 4, kind: input, shape index: {}]   ;;  %s253_s5 = inlined_call_operand.hbm [shape: f32[8,32], index: 5, kind: output, shape index: {}]  }
   0x1   :  { %v25_v0 = vld [vmem:[%s249_s1 + $0x18] sm:$0xff]  ;;  %v24_v1 = vld [vmem:[%s249_s1 + $0x10] sm:$0xff]  ;;  %v23_v3 = vld [vmem:[%s249_s1 + $0x8] sm:$0xff] }
   0x2   :  { %46 = vmatpush.msra.mxu0 %v25_v0  ;;  %v70_v2 = vld [vmem:[%s251_s3 + $0x78] sm:$0xff]  ;;  %v69_v4 = vld [vmem:[%s251_s3 + $0x70] sm:$0xff]  ;;  %v68_v5 = vld [vmem:[%s251_s3 + $0x68] sm:$0xff] }
   0x3   :  { %75 = vmatpush.msra.mxu1 %v70_v2  ;;  %v22_v6 = vld [vmem:[%s249_s1] sm:$0xff]  ;;  %v66_v9 = vld [vmem:[%s251_s3 + $0x58] sm:$0xff] }
   0x4   :  { %47 = vmatpush.msra.mxu0 %v24_v1  ;;  %v21_v7 = vld [vmem:[%s248_s0] sm:$0xff] }
   0x5   :  { %76 = vmatpush.msra.mxu1 %v69_v4  ;;  %v67_v8 = vld [vmem:[%s251_s3 + $0x60] sm:$0xff] }
   0x6   :  { %48 = vmatpush.msra.mxu0 %v23_v3 }
   0x7   :  { %77 = vmatpush.msra.mxu1 %v68_v5 }
   0x8   :  { %49 = vmatpush.msra.mxu0 %v22_v6 }
   0x9   :  { %10 = vsyncpa [#allocation3], 0  ;;  %113 = vmatmul.msk.f32.vlgmr.msra.gmra.mxu0 %vm30_vm0, %v21_v7  ;;  %78 = vmatpush.msra.mxu1 %v67_v8  ;;  %v65_v10 = vld [vmem:[%s251_s3 + $0x50] sm:$0xff]  ;;  %v64_v11 = vld [vmem:[%s251_s3 + $0x48] sm:$0xff]  ;;  %s143_s12 = smov [#allocation2]  }
   0xa   :  { %v63_v12 = vld [vmem:[%s251_s3 + $0x40] sm:$0xff]  ;;  %v62_v13 = vld [vmem:[%s251_s3 + $0x38] sm:$0xff]  ;;  %v61_v14 = vld [vmem:[%s251_s3 + $0x30] sm:$0xff]  ;;  %s102_s1 = sshll.u32 %s143_s12, 4  ;;  %s103_s1 = int_to_ptr.vmem [resolvable:$true] %s102_s1 }
   0xb   :  { %79 = vmatpush.msra.mxu1 %v66_v9  ;;  %v60_v15 = vld [vmem:[%s251_s3 + $0x28] sm:$0xff]  ;;  %v59_v16 = vld [vmem:[%s251_s3 + $0x20] sm:$0xff]  ;;  %v58_v17 = vld [vmem:[%s251_s3 + $0x18] sm:$0xff] }
   0xc   :  { %v57_v18 = vld [vmem:[%s251_s3 + $0x10] sm:$0xff]  ;;  %v56_v19 = vld [vmem:[%s251_s3 + $0x8] sm:$0xff]  ;;  %v55_v20 = vld [vmem:[%s251_s3] sm:$0xff]  ;;  %s104_s3 = sshll.u32 %s253_s5, 4  ;;  %s105_s3 = int_to_ptr.hbm [resolvable:$true] %s104_s3 }
   0xd   :  { %80 = vmatpush.msra.mxu1 %v65_v10  ;;  %v115_v21 = vld [vmem:[%s250_s2] ss:$0 sm:$0xff] }
   0xe   :  { %v116_v25 = vld [vmem:[%s252_s4] ss:$0 sm:$0xff] }
   0xf   :  { %81 = vmatpush.msra.mxu1 %v64_v11 }
  0x11   :  { %82 = vmatpush.msra.mxu1 %v63_v12 }
  0x13   :  { %83 = vmatpush.msra.mxu1 %v62_v13 }
  0x15   :  { %84 = vmatpush.msra.mxu1 %v61_v14 }
  0x17   :  { %85 = vmatpush.msra.mxu1 %v60_v15 }
  0x19   :  { %86 = vmatpush.msra.mxu1 %v59_v16 }
  0x1b   :  { %87 = vmatpush.msra.mxu1 %v58_v17 }
  0x1d   :  { %88 = vmatpush.msra.mxu1 %v57_v18 }
  0x1f   :  { %89 = vmatpush.msra.mxu1 %v56_v19 }
  0x21   :  { %90 = vmatpush.msra.mxu1 %v55_v20 }
  0x86   :  { %v51_v22 = vpop.f32.mrf.mxu0 }
  0x87   :  { %v52_v23 = vadd.f32 %v115_v21, %v51_v22 }
  0x89   :  { %v54_v24 = vmax.f32 %v52_v23, 0.0 }
  0x8b   :  { %91 = vmatmul.f32.vlgmr.msra.gmra.mxu1 %v54_v24 }
 0x108   :  { %v92_v26 = vpop.f32.mrf.mxu1 }
 0x109   :  { %v93_v27 = vadd.f32 %v116_v25, %v92_v26 }
 0x10b   :  { %v95_v28 = vmax.f32 %v93_v27, 0.0 }
 0x10d   :  { %96 = vst.msk [vmem:[#allocation2] sm:$0xff] %vm30_vm0, %v95_v28 }
 0x10e   :  { %107 = dma.vmem_to_hbm [thread:$0]  %s103_s1, 128, %s105_s3, [#allocation3]  }
 0x10f   :  { %141 = dma.done.wait [#allocation3], 128  }
 0x110   :  { %142 = vsyncadd [#allocation3], 4294967168 }
 0x111   :  { %112 = vsyncpa [#allocation3], 1 }

// kernel: tpu_custom_call.1
= control target key start
LH: loop header
LB: loop body
LE: loop exit
PB: predicated region body
PF: predicated region fallthrough
CT: control target
= control target key end

     0   :  { %vm30_vm0 = vcmask 261120   ;;  %s248_s0 = inlined_call_operand.vmem [shape: f32[8,32], index: 0, kind: input, shape index: {}]   ;;  %s249_s1 = inlined_call_operand.vmem [shape: f32[32,128], index: 1, kind: input, shape index: {}]   ;;  %s250_s2 = inlined_call_operand.vmem [shape: f32[1,128], index: 2, kind: input, shape index: {}]   ;;  %s251_s3 = inlined_call_operand.vmem [shape: f32[128,32], index: 3, kind: input, shape index: {}]   ;;  %s252_s4 = inlined_call_operand.vmem [shape: f32[1,32], index: 4, kind: input, shape index: {}]   ;;  %s253_s5 = inlined_call_operand.hbm [shape: f32[8,32], index: 5, kind: output, shape index: {}]  }
   0x1   :  { %v25_v0 = vld [vmem:[%s249_s1 + $0x18] sm:$0xff]  ;;  %v24_v1 = vld [vmem:[%s249_s1 + $0x10] sm:$0xff]  ;;  %v23_v3 = vld [vmem:[%s249_s1 + $0x8] sm:$0xff] }
   0x2   :  { %46 = vmatpush.msra.mxu0 %v25_v0  ;;  %v70_v2 = vld [vmem:[%s251_s3 + $0x78] sm:$0xff]  ;;  %v69_v4 = vld [vmem:[%s251_s3 + $0x70] sm:$0xff]  ;;  %v68_v5 = vld [vmem:[%s251_s3 + $0x68] sm:$0xff] }
   0x3   :  { %75 = vmatpush.msra.mxu1 %v70_v2  ;;  %v22_v6 = vld [vmem:[%s249_s1] sm:$0xff]  ;;  %v66_v9 = vld [vmem:[%s251_s3 + $0x58] sm:$0xff] }
   0x4   :  { %47 = vmatpush.msra.mxu0 %v24_v1  ;;  %v21_v7 = vld [vmem:[%s248_s0] sm:$0xff] }
   0x5   :  { %76 = vmatpush.msra.mxu1 %v69_v4  ;;  %v67_v8 = vld [vmem:[%s251_s3 + $0x60] sm:$0xff] }
   0x6   :  { %48 = vmatpush.msra.mxu0 %v23_v3 }
   0x7   :  { %77 = vmatpush.msra.mxu1 %v68_v5 }
   0x8   :  { %49 = vmatpush.msra.mxu0 %v22_v6 }
   0x9   :  { %10 = vsyncpa [#allocation3], 0  ;;  %113 = vmatmul.msk.f32.vlgmr.msra.gmra.mxu0 %vm30_vm0, %v21_v7  ;;  %78 = vmatpush.msra.mxu1 %v67_v8  ;;  %v65_v10 = vld [vmem:[%s251_s3 + $0x50] sm:$0xff]  ;;  %v64_v11 = vld [vmem:[%s251_s3 + $0x48] sm:$0xff]  ;;  %s143_s12 = smov [#allocation2]  }
   0xa   :  { %v63_v12 = vld [vmem:[%s251_s3 + $0x40] sm:$0xff]  ;;  %v62_v13 = vld [vmem:[%s251_s3 + $0x38] sm:$0xff]  ;;  %v61_v14 = vld [vmem:[%s251_s3 + $0x30] sm:$0xff]  ;;  %s102_s1 = sshll.u32 %s143_s12, 4  ;;  %s103_s1 = int_to_ptr.vmem [resolvable:$true] %s102_s1 }
   0xb   :  { %79 = vmatpush.msra.mxu1 %v66_v9  ;;  %v60_v15 = vld [vmem:[%s251_s3 + $0x28] sm:$0xff]  ;;  %v59_v16 = vld [vmem:[%s251_s3 + $0x20] sm:$0xff]  ;;  %v58_v17 = vld [vmem:[%s251_s3 + $0x18] sm:$0xff] }
   0xc   :  { %v57_v18 = vld [vmem:[%s251_s3 + $0x10] sm:$0xff]  ;;  %v56_v19 = vld [vmem:[%s251_s3 + $0x8] sm:$0xff]  ;;  %v55_v20 = vld [vmem:[%s251_s3] sm:$0xff]  ;;  %s104_s3 = sshll.u32 %s253_s5, 4  ;;  %s105_s3 = int_to_ptr.hbm [resolvable:$true] %s104_s3 }
   0xd   :  { %80 = vmatpush.msra.mxu1 %v65_v10  ;;  %v115_v21 = vld [vmem:[%s250_s2] ss:$0 sm:$0xff] }
   0xe   :  { %v116_v25 = vld [vmem:[%s252_s4] ss:$0 sm:$0xff] }
   0xf   :  { %81 = vmatpush.msra.mxu1 %v64_v11 }
  0x11   :  { %82 = vmatpush.msra.mxu1 %v63_v12 }
  0x13   :  { %83 = vmatpush.msra.mxu1 %v62_v13 }
  0x15   :  { %84 = vmatpush.msra.mxu1 %v61_v14 }
  0x17   :  { %85 = vmatpush.msra.mxu1 %v60_v15 }
  0x19   :  { %86 = vmatpush.msra.mxu1 %v59_v16 }
  0x1b   :  { %87 = vmatpush.msra.mxu1 %v58_v17 }
  0x1d   :  { %88 = vmatpush.msra.mxu1 %v57_v18 }
  0x1f   :  { %89 = vmatpush.msra.mxu1 %v56_v19 }
  0x21   :  { %90 = vmatpush.msra.mxu1 %v55_v20 }
  0x86   :  { %v51_v22 = vpop.f32.mrf.mxu0 }
  0x87   :  { %v52_v23 = vadd.f32 %v115_v21, %v51_v22 }
  0x89   :  { %v54_v24 = vmax.f32 %v52_v23, 0.0 }
  0x8b   :  { %91 = vmatmul.f32.vlgmr.msra.gmra.mxu1 %v54_v24 }
 0x108   :  { %v92_v26 = vpop.f32.mrf.mxu1 }
 0x109   :  { %v93_v27 = vadd.f32 %v116_v25, %v92_v26 }
 0x10b   :  { %v95_v28 = vmax.f32 %v93_v27, 0.0 }
 0x10d   :  { %96 = vst.msk [vmem:[#allocation2] sm:$0xff] %vm30_vm0, %v95_v28 }
 0x10e   :  { %107 = dma.vmem_to_hbm [thread:$0]  %s103_s1, 128, %s105_s3, [#allocation3]  }
 0x10f   :  { %141 = dma.done.wait [#allocation3], 128  }
 0x110   :  { %142 = vsyncadd [#allocation3], 4294967168 }
 0x111   :  { %112 = vsyncpa [#allocation3], 1 }

</bundles_post_ra>
